<compile_context>
chip_gen: v7x
topology: tpu7x:2x2x1
jax: 0.10.0
libtpu: 0.0.40
codegen_flags: <defaults>
</compile_context>

<pallas_src>
import jax
import jax.numpy as jnp
from jax.experimental import pallas as pl
from jax.experimental.pallas import tpu as pltpu


REPARAM_NOISE = 1e-6
_MIN_TILE = 256          # batch-tile granularity (multiple of 8 sublanes / 256 rows)


def _actor_forward_kernel(x_ref,
                          w1_ref, b1_ref,
                          w2_ref, b2_ref,
                          wh_ref, bh_ref,
                          lo_ref, hi_ref,
                          out_ref):
    wdt = w1_ref.dtype

    # fc1 + relu  (bf16 (or f32) operands on the MXU, f32 accumulate, f32 VPU math)
    x = x_ref[...].astype(wdt)
    h1 = jnp.dot(x, w1_ref[...], preferred_element_type=jnp.float32) + b1_ref[...]
    h1 = jnp.maximum(h1, 0.0)

    # fc2 + relu
    h2 = jnp.dot(h1.astype(wdt), w2_ref[...], preferred_element_type=jnp.float32) + b2_ref[...]
    h2 = jnp.maximum(h2, 0.0)

    # fused, 128-lane-padded mu/sigma head: one matmul, one lane-dense store
    head = jnp.dot(h2.astype(wdt), wh_ref[...], preferred_element_type=jnp.float32) + bh_ref[...]

    # per-lane clamp: mu lanes see (-inf, +inf) (pass-through), sigma lanes see (1e-6, 1.0)
    out_ref[...] = jnp.minimum(jnp.maximum(head, lo_ref[...]), hi_ref[...]).astype(out_ref.dtype)


def prepare_params(params, weight_dtype=jnp.bfloat16):
    """One-time parameter preprocessing (call at load/update time, NOT per forward).

    Transposes weights to (in, out), fuses + zero-pads the mu/sigma heads into a
    single (fc2, 128*k) weight / (1, 128*k) bias so the output store is lane
    dense, reshapes biases to (1, out), casts weights to `weight_dtype` (bf16 by
    default), and bakes per-lane clamp bounds (lo/hi) for the sigma lanes.
    """
    n_actions, fc2 = params["wmu"].shape
    head_width = max(128, pl.cdiv(2 * n_actions, 128) * 128)

    w1 = params["w1"].T.astype(weight_dtype)                      # (in,  fc1)
    w2 = params["w2"].T.astype(weight_dtype)                      # (fc1, fc2)
    b1 = params["b1"].reshape(1, -1).astype(jnp.float32)
    b2 = params["b2"].reshape(1, -1).astype(jnp.float32)

    whead = jnp.zeros((fc2, head_width), weight_dtype)
    whead = whead.at[:, :n_actions].set(params["wmu"].T.astype(weight_dtype))
    whead = whead.at[:, n_actions:2 * n_actions].set(params["wsig"].T.astype(weight_dtype))
    bhead = jnp.zeros((1, head_width), jnp.float32)
    bhead = bhead.at[0, :n_actions].set(params["bmu"].astype(jnp.float32))
    bhead = bhead.at[0, n_actions:2 * n_actions].set(params["bsig"].astype(jnp.float32))

    lane = jnp.arange(head_width)
    is_sigma = (lane >= n_actions) & (lane < 2 * n_actions)
    lo = jnp.where(is_sigma, jnp.float32(REPARAM_NOISE), -jnp.inf).reshape(1, -1).astype(jnp.float32)
    hi = jnp.where(is_sigma, jnp.float32(1.0), jnp.inf).reshape(1, -1).astype(jnp.float32)

    return {"w1": w1, "b1": b1, "w2": w2, "b2": b2,
            "whead": whead, "bhead": bhead, "lo": lo, "hi": hi}


def actor_forward(state, prepped, *, n_actions, block_batch=2048):
    """Fused actor forward.

    state:   (batch, input_dim) float32
    prepped: output of prepare_params(...)
    n_actions: static int (true number of actions; head is padded to 128 lanes)
    Returns (mu, sigma), each (batch, n_actions) float32.
    """
    batch, in_dim = state.shape
    w1, b1 = prepped["w1"], prepped["b1"]
    w2, b2 = prepped["w2"], prepped["b2"]
    wh, bh = prepped["whead"], prepped["bhead"]
    lo, hi = prepped["lo"], prepped["hi"]
    head_width = bh.shape[-1]

    # --- cdiv-based batch tiling -------------------------------------------
    # Small batches: one tile (block == full batch dim, (8,128)-legal).
    # Larger batches: tiles are multiples of _MIN_TILE, capped at block_batch,
    # and chosen so there are always >= 2 tiles (populates the v7x 2-TC
    # "parallel" axis).  Ragged tails are zero-padded here and sliced off after.
    if batch <= _MIN_TILE:
        tb = batch
    else:
        half = (batch + 1) // 2
        tb = min(block_batch, pl.cdiv(half, _MIN_TILE) * _MIN_TILE)
    padded_batch = pl.cdiv(batch, tb) * tb
    x = state
    if padded_batch != batch:
        x = jnp.pad(state, ((0, padded_batch - batch), (0, 0)))
    grid = (padded_batch // tb,)

    fc1 = w1.shape[1]
    fc2 = w2.shape[1]
    flops = 2 * padded_batch * (in_dim * fc1 + fc1 * fc2 + fc2 * head_width)
    bytes_accessed = (
        int(x.size) * x.dtype.itemsize
        + sum(int(a.size) * a.dtype.itemsize for a in (w1, b1, w2, b2, wh, bh, lo, hi))
        + padded_batch * head_width * 4
    )

    def full(a):
        # whole-array block with a constant index_map: fetched once, stays
        # VMEM-resident across all batch tiles.  (pipeline_mode=pl.Buffered(1)
        # would drop the second pipeline buffer; omitted -- ~134 KiB, negligible.)
        return pl.BlockSpec(a.shape, lambda i: (0, 0))

    out = pl.pallas_call(
        _actor_forward_kernel,
        out_shape=jax.ShapeDtypeStruct((padded_batch, head_width), jnp.float32),
        grid=grid,
        in_specs=[pl.BlockSpec((tb, in_dim), lambda i: (i, 0)),
                  full(w1), full(b1),
                  full(w2), full(b2),
                  full(wh), full(bh),
                  full(lo), full(hi)],
        out_specs=pl.BlockSpec((tb, head_width), lambda i: (i, 0)),
        compiler_params=pltpu.CompilerParams(
            dimension_semantics=("parallel",),
            vmem_limit_bytes=48 * 1024 * 1024),
        cost_estimate=pl.CostEstimate(flops=flops, transcendentals=0,
                                      bytes_accessed=bytes_accessed),
    )(x, w1, b1, w2, b2, wh, bh, lo, hi)

    mu = out[:batch, :n_actions]
    sigma = out[:batch, n_actions:2 * n_actions]
    return mu, sigma


def sample_normal(key, state, prepped, *, n_actions, max_action=1.0, reparameterize=True):
    """SAC action sampling (rsample + tanh squash + log-prob), host-side on (mu, sigma).

    # TODO(synk): fuse this tail into the Pallas kernel after the head matmul
    # (exp/tanh/log run on the idle EUP slot); kept in plain JAX here because it
    # needs in-kernel PRNG state plumbing, and only the forward is kernelized.
    """
    mu, sigma = actor_forward(state, prepped, n_actions=n_actions)
    eps = jax.random.normal(key, mu.shape, mu.dtype)
    if not reparameterize:
        eps = jax.lax.stop_gradient(eps)
    pre_tanh = mu + sigma * eps
    t = jnp.tanh(pre_tanh)
    action = t * jnp.asarray(max_action, mu.dtype)
    log_probs = (-0.5 * ((pre_tanh - mu) / sigma) ** 2
                 - jnp.log(sigma) - 0.5 * jnp.log(2.0 * jnp.pi))
    log_probs = log_probs - jnp.log(1.0 - t * t + REPARAM_NOISE)
    return action, jnp.sum(log_probs, axis=1, keepdims=True)


def init_params(key, input_dim, fc1_dims, fc2_dims, n_actions):
    """Deterministic synthetic initialization (PyTorch Linear-like uniform fan-in)."""
    ks = jax.random.split(key, 8)

    def linear(kw, kb, out_f, in_f):
        bound = 1.0 / jnp.sqrt(jnp.float32(in_f))
        w = jax.random.uniform(kw, (out_f, in_f), jnp.float32, -bound, bound)
        b = jax.random.uniform(kb, (out_f,), jnp.float32, -bound, bound)
        return w, b

    w1, b1 = linear(ks[0], ks[1], fc1_dims, input_dim)
    w2, b2 = linear(ks[2], ks[3], fc2_dims, fc1_dims)
    wmu, bmu = linear(ks[4], ks[5], n_actions, fc2_dims)
    wsig, bsig = linear(ks[6], ks[7], n_actions, fc2_dims)
    return {"w1": w1, "b1": b1, "w2": w2, "b2": b2,
            "wmu": wmu, "bmu": bmu, "wsig": wsig, "bsig": bsig}


def _bf16_reference(x, prepped, n_actions):
    """Pure-JAX reference matching the bf16-weight / f32-accumulate kernel math."""
    h1 = jnp.maximum(jnp.dot(x.astype(jnp.bfloat16), prepped["w1"],
                             preferred_element_type=jnp.float32) + prepped["b1"], 0.0)
    h2 = jnp.maximum(jnp.dot(h1.astype(jnp.bfloat16), prepped["w2"],
                             preferred_element_type=jnp.float32) + prepped["b2"], 0.0)
    head = jnp.dot(h2.astype(jnp.bfloat16), prepped["whead"],
                   preferred_element_type=jnp.float32) + prepped["bhead"]
    mu = head[:, :n_actions]
    sigma = jnp.clip(head[:, n_actions:2 * n_actions], REPARAM_NOISE, 1.0)
    return mu, sigma


if __name__ == "__main__":
    key = jax.random.PRNGKey(0)
    k_params, k_state, k_noise = jax.random.split(key, 3)

    batch = 8              # >= 8 so the f32 sublane height is fully used
    input_dim = 8          # input_dims = (8,)
    fc1_dims = 256
    fc2_dims = 256
    n_actions = 2

    params = init_params(k_params, input_dim, fc1_dims, fc2_dims, n_actions)
    state = jax.random.normal(k_state, (batch, input_dim), jnp.float32)

    fwd = jax.jit(actor_forward, static_argnames=("n_actions", "block_batch"))

    # --- f32-weight path: exact match to the original PyTorch forward math ---
    prepped_f32 = prepare_params(params, weight_dtype=jnp.float32)
    mu32, sigma32 = fwd(state, prepped_f32, n_actions=n_actions)
    jax.block_until_ready((mu32, sigma32))

    h1 = jnp.maximum(state @ params["w1"].T + params["b1"], 0.0)
    h2 = jnp.maximum(h1 @ params["w2"].T + params["b2"], 0.0)
    mu_ref = h2 @ params["wmu"].T + params["bmu"]
    sigma_ref = jnp.clip(h2 @ params["wsig"].T + params["bsig"], REPARAM_NOISE, 1.0)
    assert jnp.allclose(mu32, mu_ref, atol=1e-5, rtol=1e-5)
    assert jnp.allclose(sigma32, sigma_ref, atol=1e-5, rtol=1e-5)

    # --- bf16-weight fast path: check against a matching bf16/f32-accum reference ---
    prepped = prepare_params(params, weight_dtype=jnp.bfloat16)
    mu, sigma = fwd(state, prepped, n_actions=n_actions)
    jax.block_until_ready((mu, sigma))

    mu_refb, sigma_refb = _bf16_reference(state, prepped, n_actions)
    assert mu.shape == (batch, n_actions) and sigma.shape == (batch, n_actions)
    assert jnp.allclose(mu, mu_refb, atol=1e-2, rtol=1e-2)
    assert jnp.allclose(sigma, sigma_refb, atol=1e-2, rtol=1e-2)

    # --- large ragged batch: exercises cdiv tiling, tail padding, and the
    #     >=2-tile "parallel" batch grid (both v7x TensorCores) ---
    big_batch = 1000
    state_big = jax.random.normal(k_state, (big_batch, input_dim), jnp.float32)
    mu_b, sigma_b = fwd(state_big, prepped, n_actions=n_actions)
    jax.block_until_ready((mu_b, sigma_b))

    mu_refc, sigma_refc = _bf16_reference(state_big, prepped, n_actions)
    assert mu_b.shape == (big_batch, n_actions) and sigma_b.shape == (big_batch, n_actions)
    assert jnp.allclose(mu_b, mu_refc, atol=1e-2, rtol=1e-2)
    assert jnp.allclose(sigma_b, sigma_refc, atol=1e-2, rtol=1e-2)

    # --- sample_normal (host-side composition over the kernelized forward) ---
    action, log_probs = sample_normal(k_noise, state, prepped,
                                      n_actions=n_actions, max_action=1.0)
    jax.block_until_ready((action, log_probs))
    assert action.shape == (batch, n_actions) and log_probs.shape == (batch, 1)
    assert bool(jnp.all(jnp.abs(action) <= 1.0))

    print("KERNEL_OK")
</pallas_src>

<mosaic_0001>
module attributes {stable_mosaic.version = 11 : i64} {
  func.func @_actor_forward_kernel(%arg0: i32, %arg1: memref<8x8xf32, #tpu.memory_space<vmem>>, %arg2: memref<8x256xf32, #tpu.memory_space<vmem>>, %arg3: memref<1x256xf32, #tpu.memory_space<vmem>>, %arg4: memref<256x256xf32, #tpu.memory_space<vmem>>, %arg5: memref<1x256xf32, #tpu.memory_space<vmem>>, %arg6: memref<256x128xf32, #tpu.memory_space<vmem>>, %arg7: memref<1x128xf32, #tpu.memory_space<vmem>>, %arg8: memref<1x128xf32, #tpu.memory_space<vmem>>, %arg9: memref<1x128xf32, #tpu.memory_space<vmem>>, %arg10: memref<8x128xf32, #tpu.memory_space<vmem>>) attributes {dimension_semantics = [#tpu.dimension_semantics<parallel>], iteration_bounds = array<i64: 1>, scalar_prefetch = 0 : i64, scratch_operands = 0 : i64, tpu.core_type = #tpu.core_type<tc>, window_params = [{transform_indices = @transform_0, window_bounds = array<i64: 8, 8>}, {pipeline_mode = #tpu.pipeline_mode<synchronous>, transform_indices = @transform_1, window_bounds = array<i64: 8, 256>}, {pipeline_mode = #tpu.pipeline_mode<synchronous>, transform_indices = @transform_2, window_bounds = array<i64: 1, 256>}, {pipeline_mode = #tpu.pipeline_mode<synchronous>, transform_indices = @transform_3, window_bounds = array<i64: 256, 256>}, {pipeline_mode = #tpu.pipeline_mode<synchronous>, transform_indices = @transform_4, window_bounds = array<i64: 1, 256>}, {pipeline_mode = #tpu.pipeline_mode<synchronous>, transform_indices = @transform_5, window_bounds = array<i64: 256, 128>}, {pipeline_mode = #tpu.pipeline_mode<synchronous>, transform_indices = @transform_6, window_bounds = array<i64: 1, 128>}, {pipeline_mode = #tpu.pipeline_mode<synchronous>, transform_indices = @transform_7, window_bounds = array<i64: 1, 128>}, {pipeline_mode = #tpu.pipeline_mode<synchronous>, transform_indices = @transform_8, window_bounds = array<i64: 1, 128>}, {transform_indices = @transform_9, window_bounds = array<i64: 8, 128>}]} {
    %c0 = arith.constant 0 : index
    %c0_0 = arith.constant 0 : index
    %0 = vector.load %arg1[%c0, %c0_0] : memref<8x8xf32, #tpu.memory_space<vmem>>, vector<8x8xf32>
    %c0_1 = arith.constant 0 : index
    %c0_2 = arith.constant 0 : index
    %1 = vector.load %arg2[%c0_1, %c0_2] : memref<8x256xf32, #tpu.memory_space<vmem>>, vector<8x256xf32>
    %cst = arith.constant dense<0.000000e+00> : vector<8x256xf32>
    %2 = tpu.matmul %0, %1, %cst {dimension_numbers = #tpu.dot_dimension_numbers<[1], [0], [0], [1], [0, 0, 1, 1], [], []>} : vector<8x8xf32>, vector<8x256xf32>, vector<8x256xf32> -> vector<8x256xf32>
    %c0_3 = arith.constant 0 : index
    %c0_4 = arith.constant 0 : index
    %3 = vector.load %arg3[%c0_3, %c0_4] : memref<1x256xf32, #tpu.memory_space<vmem>>, vector<1x256xf32>
    %4 = vector.broadcast %3 : vector<1x256xf32> to vector<8x256xf32>
    %5 = arith.addf %2, %4 : vector<8x256xf32>
    %cst_5 = arith.constant 0.000000e+00 : f32
    %6 = vector.broadcast %cst_5 : f32 to vector<8x256xf32>
    %7 = arith.maximumf %5, %6 : vector<8x256xf32>
    %c0_6 = arith.constant 0 : index
    %c0_7 = arith.constant 0 : index
    %8 = vector.load %arg4[%c0_6, %c0_7] : memref<256x256xf32, #tpu.memory_space<vmem>>, vector<256x256xf32>
    %cst_8 = arith.constant dense<0.000000e+00> : vector<8x256xf32>
    %9 = tpu.matmul %7, %8, %cst_8 {dimension_numbers = #tpu.dot_dimension_numbers<[1], [0], [0], [1], [0, 0, 1, 1], [], []>} : vector<8x256xf32>, vector<256x256xf32>, vector<8x256xf32> -> vector<8x256xf32>
    %c0_9 = arith.constant 0 : index
    %c0_10 = arith.constant 0 : index
    %10 = vector.load %arg5[%c0_9, %c0_10] : memref<1x256xf32, #tpu.memory_space<vmem>>, vector<1x256xf32>
    %11 = vector.broadcast %10 : vector<1x256xf32> to vector<8x256xf32>
    %12 = arith.addf %9, %11 : vector<8x256xf32>
    %cst_11 = arith.constant 0.000000e+00 : f32
    %13 = vector.broadcast %cst_11 : f32 to vector<8x256xf32>
    %14 = arith.maximumf %12, %13 : vector<8x256xf32>
    %c0_12 = arith.constant 0 : index
    %c0_13 = arith.constant 0 : index
    %15 = vector.load %arg6[%c0_12, %c0_13] : memref<256x128xf32, #tpu.memory_space<vmem>>, vector<256x128xf32>
    %cst_14 = arith.constant dense<0.000000e+00> : vector<8x128xf32>
    %16 = tpu.matmul %14, %15, %cst_14 {dimension_numbers = #tpu.dot_dimension_numbers<[1], [0], [0], [1], [0, 0, 1, 1], [], []>} : vector<8x256xf32>, vector<256x128xf32>, vector<8x128xf32> -> vector<8x128xf32>
    %c0_15 = arith.constant 0 : index
    %c0_16 = arith.constant 0 : index
    %17 = vector.load %arg7[%c0_15, %c0_16] : memref<1x128xf32, #tpu.memory_space<vmem>>, vector<1x128xf32>
    %18 = vector.broadcast %17 : vector<1x128xf32> to vector<8x128xf32>
    %19 = arith.addf %16, %18 : vector<8x128xf32>
    %c0_17 = arith.constant 0 : index
    %c0_18 = arith.constant 0 : index
    %20 = vector.load %arg8[%c0_17, %c0_18] : memref<1x128xf32, #tpu.memory_space<vmem>>, vector<1x128xf32>
    %21 = vector.broadcast %20 : vector<1x128xf32> to vector<8x128xf32>
    %22 = arith.maximumf %19, %21 : vector<8x128xf32>
    %c0_19 = arith.constant 0 : index
    %c0_20 = arith.constant 0 : index
    %23 = vector.load %arg9[%c0_19, %c0_20] : memref<1x128xf32, #tpu.memory_space<vmem>>, vector<1x128xf32>
    %24 = vector.broadcast %23 : vector<1x128xf32> to vector<8x128xf32>
    %25 = arith.minimumf %22, %24 : vector<8x128xf32>
    %c0_21 = arith.constant 0 : index
    %c0_22 = arith.constant 0 : index
    %26 = vector.load %arg10[%c0_21, %c0_22] : memref<8x128xf32, #tpu.memory_space<vmem>>, vector<8x128xf32>
    tpu.vector_store %arg10[%c0_21, %c0_22], %25 {strides = array<i32>} : memref<8x128xf32, #tpu.memory_space<vmem>>, vector<8x128xf32>,
    return
  }
  func.func @transform_0(%arg0: i32) -> (i32, i32) {
    %c0_i32 = arith.constant 0 : i32
    %c0_i32_0 = arith.constant 0 : i32
    return %arg0, %c0_i32 : i32, i32
  }
  func.func @transform_1(%arg0: i32) -> (i32, i32) {
    %c0_i32 = arith.constant 0 : i32
    %c0_i32_0 = arith.constant 0 : i32
    %c0_i32_1 = arith.constant 0 : i32
    return %c0_i32, %c0_i32_0 : i32, i32
  }
  func.func @transform_2(%arg0: i32) -> (i32, i32) {
    %c0_i32 = arith.constant 0 : i32
    %c0_i32_0 = arith.constant 0 : i32
    %c0_i32_1 = arith.constant 0 : i32
    return %c0_i32, %c0_i32_0 : i32, i32
  }
  func.func @transform_3(%arg0: i32) -> (i32, i32) {
    %c0_i32 = arith.constant 0 : i32
    %c0_i32_0 = arith.constant 0 : i32
    %c0_i32_1 = arith.constant 0 : i32
    return %c0_i32, %c0_i32_0 : i32, i32
  }
  func.func @transform_4(%arg0: i32) -> (i32, i32) {
    %c0_i32 = arith.constant 0 : i32
    %c0_i32_0 = arith.constant 0 : i32
    %c0_i32_1 = arith.constant 0 : i32
    return %c0_i32, %c0_i32_0 : i32, i32
  }
  func.func @transform_5(%arg0: i32) -> (i32, i32) {
    %c0_i32 = arith.constant 0 : i32
    %c0_i32_0 = arith.constant 0 : i32
    %c0_i32_1 = arith.constant 0 : i32
    return %c0_i32, %c0_i32_0 : i32, i32
  }
  func.func @transform_6(%arg0: i32) -> (i32, i32) {
    %c0_i32 = arith.constant 0 : i32
    %c0_i32_0 = arith.constant 0 : i32
    %c0_i32_1 = arith.constant 0 : i32
    return %c0_i32, %c0_i32_0 : i32, i32
  }
  func.func @transform_7(%arg0: i32) -> (i32, i32) {
    %c0_i32 = arith.constant 0 : i32
    %c0_i32_0 = arith.constant 0 : i32
    %c0_i32_1 = arith.constant 0 : i32
    return %c0_i32, %c0_i32_0 : i32, i32
  }
  func.func @transform_8(%arg0: i32) -> (i32, i32) {
    %c0_i32 = arith.constant 0 : i32
    %c0_i32_0 = arith.constant 0 : i32
    %c0_i32_1 = arith.constant 0 : i32
    return %c0_i32, %c0_i32_0 : i32, i32
  }
  func.func @transform_9(%arg0: i32) -> (i32, i32) {
    %c0_i32 = arith.constant 0 : i32
    %c0_i32_0 = arith.constant 0 : i32
    return %arg0, %c0_i32 : i32, i32
  }
}

</mosaic_0001>

<bundles_post_ra>
// kernel: actor_forward.1
= control target key start
LH: loop header
LB: loop body
LE: loop exit
PB: predicated region body
PF: predicated region fallthrough
CT: control target
= control target key end

     0   :  { %14 = vsyncpa [#allocation3], 0  ;;  %s823_s0 = inlined_call_operand.hbm [shape: f32[8,8], index: 0, kind: input, shape index: {}]   ;;  %s824_s1 = inlined_call_operand.vmem [shape: f32[8,256], index: 1, kind: input, shape index: {}]   ;;  %s825_s2 = inlined_call_operand.vmem [shape: f32[1,256], index: 2, kind: input, shape index: {}]   ;;  %s826_s3 = inlined_call_operand.hbm [shape: f32[256,256], index: 3, kind: input, shape index: {}]   ;;  %s827_s4 = inlined_call_operand.vmem [shape: f32[1,256], index: 4, kind: input, shape index: {}]   ;;  %s828_s5 = inlined_call_operand.hbm [shape: f32[256,128], index: 5, kind: input, shape index: {}]   ;;  %s829_s6 = inlined_call_operand.vmem [shape: f32[1,128], index: 6, kind: input, shape index: {}]   ;;  %s830_s7 = inlined_call_operand.vmem [shape: f32[1,128], index: 7, kind: input, shape index: {}]   ;;  %s831_s8 = inlined_call_operand.hbm [shape: f32[1,128], index: 8, kind: input, shape index: {}]   ;;  %s832_s9 = inlined_call_operand.vmem [shape: f32[8,128], index: 9, kind: output, shape index: {}]  }
   0x1   :  { %15 = vsyncpa [#allocation5], 0 }
   0x2   :  { %16 = vsyncpa [#allocation8], 0  ;;  %s695_s30 = smov [#allocation4]   ;;  %s601_s13 = scalar_lea.hbm %s826_s3, 8192 }
   0x3   :  { %s36_s10 = sshll.u32 %s695_s30, 4  ;;  %p602_p0 = scmp.ne.s32.totalorder %s826_s3, %s601_s13  ;;  %s37_s10 = int_to_ptr.vmem [resolvable:$true] %s36_s10 }
   0x4   :  { %p605_p1 = scmp.lt.u32.totalorder %s601_s13, %s826_s3 }
   0x6   :  { %p607_p2 = pnand %p605_p1, %p602_p0 }
   0x8   :  { %610 = shalt.err (!%p607_p2)
}
   0x9   :  { %s611_s18 = scalar_lea.vmem %s37_s10, 8192  ;;  %p616_p4 = scmp.lt.s32.totalorder %s37_s10, %s37_s10 }
   0xa   :  { %p612_p3 = scmp.ne.s32.totalorder %s37_s10, %s611_s18  ;;  %p617_p5 = scmp.lt.s32.totalorder %s611_s18, %s611_s18 }
   0xc   :  { %p618_p6 = por %p617_p5, %p616_p4 }
   0xe   :  { %p619_p7 = pnand %p618_p6, %p612_p3 }
  0x10   :  { %622 = shalt.err (!%p619_p7)
}
  0x11   :  { %s696_s19 = smov 256   ;;  %s697_s20 = smov 16  }
  0x12   :  { %42 = dma.hbm_to_vmem [thread:$0]  %s826_s3, 8192, %s37_s10, [#allocation5], %s696_s19, %s696_s19, %s697_s20  }
  0x13   :  { %s698_s23 = smov [#allocation2]   ;;  %s699_s25 = smov [#allocation6]  }
  0x14   :  { %s23_s24 = sshll.u32 %s698_s23, 4  ;;  %s50_s26 = sshll.u32 %s699_s25, 4  ;;  %s24_s24 = int_to_ptr.vmem [resolvable:$true] %s23_s24  ;;  %s51_s26 = int_to_ptr.vmem [resolvable:$true] %s50_s26 }
  0x15   :  { %s623_s29 = scalar_lea.hbm %s823_s0, 128 }
  0x16   :  { %p624_p8 = scmp.ne.s32.totalorder %s823_s0, %s623_s29  ;;  %p627_p9 = scmp.lt.u32.totalorder %s623_s29, %s823_s0 }
  0x18   :  { %p629_p10 = pnand %p627_p9, %p624_p8 }
  0x1a   :  { %632 = shalt.err (!%p629_p10)
}
  0x1b   :  { %s633_s3 = scalar_lea.vmem %s24_s24, 128  ;;  %p638_p12 = scmp.lt.s32.totalorder %s24_s24, %s24_s24 }
  0x1c   :  { %p634_p11 = scmp.ne.s32.totalorder %s24_s24, %s633_s3  ;;  %p639_p13 = scmp.lt.s32.totalorder %s633_s3, %s633_s3 }
  0x1e   :  { %p640_p0 = por %p639_p13, %p638_p12 }
  0x20   :  { %p641_p1 = pnand %p640_p0, %p634_p11 }
  0x22   :  { %644 = shalt.err (!%p641_p1)
}
  0x23   :  { %26 = dma.hbm_to_vmem [thread:$0]  %s823_s0, 128, %s24_s24, [#allocation3]  }
  0x24   :  { %s645_s17 = scalar_lea.hbm %s828_s5, 4096 }
  0x25   :  { %p646_p2 = scmp.ne.s32.totalorder %s828_s5, %s645_s17  ;;  %p649_p3 = scmp.lt.u32.totalorder %s645_s17, %s828_s5 }
  0x27   :  { %p651_p4 = pnand %p649_p3, %p646_p2 }
  0x29   :  { %654 = shalt.err (!%p651_p4)
}
  0x2a   :  { %s655_s22 = scalar_lea.vmem %s51_s26, 4096  ;;  %p660_p6 = scmp.lt.s32.totalorder %s51_s26, %s51_s26 }
  0x2b   :  { %p656_p5 = scmp.ne.s32.totalorder %s51_s26, %s655_s22  ;;  %p661_p7 = scmp.lt.s32.totalorder %s655_s22, %s655_s22 }
  0x2d   :  { %p662_p8 = por %p661_p7, %p660_p6 }
  0x2f   :  { %p663_p9 = pnand %p662_p8, %p656_p5 }
  0x31   :  { %666 = shalt.err (!%p663_p9)
}
  0x32   :  { %s700_s0 = smov 128   ;;  %s701_s23 = smov 8  }
  0x33   :  { %56 = dma.hbm_to_vmem [thread:$0]  %s828_s5, 4096, %s51_s26, [#allocation5], %s700_s0, %s700_s0, %s701_s23  }
  0x34   :  { %s702_s27 = smov [#allocation7]   ;;  %s667_s11 = scalar_lea.hbm %s831_s8, 16 }
  0x35   :  { %s67_s28 = sshll.u32 %s702_s27, 4  ;;  %p668_p10 = scmp.ne.s32.totalorder %s831_s8, %s667_s11  ;;  %s68_s28 = int_to_ptr.vmem [resolvable:$true] %s67_s28 }
  0x36   :  { %p671_p11 = scmp.lt.u32.totalorder %s667_s11, %s831_s8 }
  0x38   :  { %p673_p12 = pnand %p671_p11, %p668_p10 }
  0x3a   :  { %676 = shalt.err (!%p673_p12)
}
  0x3b   :  { %s677_s14 = scalar_lea.vmem %s68_s28, 16  ;;  %s681_s5 = scalar_lea.vmem %s68_s28, 32 }
  0x3c   :  { %p678_p13 = scmp.ne.s32.totalorder %s68_s28, %s677_s14  ;;  %p682_p0 = scmp.lt.s32.totalorder %s68_s28, %s68_s28 }
  0x3d   :  { %p683_p1 = scmp.lt.s32.totalorder %s681_s5, %s677_s14 }
  0x3f   :  { %p684_p2 = por %p683_p1, %p682_p0 }
  0x41   :  { %p685_p3 = pnand %p684_p2, %p678_p13 }
  0x43   :  { %688 = shalt.err (!%p685_p3)
}
  0x44   :  { %70 = dma.hbm_to_vmem [thread:$0]  %s831_s8, 16, %s68_s28, [#allocation8]  }
  0x45   :  { %689 = dma.done.wait [#allocation3], 128  }
  0x46   :  { %690 = vsyncadd [#allocation3], 4294967168 }
  0x47   :  { %691 = dma.done.wait [#allocation5], 12288  }
  0x48   :  { %692 = vsyncadd [#allocation5], 4294955008 }
  0x49   :  { %693 = dma.done.wait [#allocation8], 16  }
  0x4a   :  { %694 = vsyncadd [#allocation8], 4294967280  ;;  %v703_v0 = vmov 0.0   ;;  %v85_v1 = vld [vmem:[%s824_s1 + $0x8] sm:$0xff]  ;;  %v84_v2 = vld [vmem:[%s824_s1] sm:$0xff]  ;;  %vm98_vm0 = vcmask 64512  }
  0x4b   :  { %166 = vmatprep.mubr.f32.mxu0 %v703_v0  ;;  %v83_v3 = vld [vmem:[#allocation2] sm:$0xff]  ;;  %102 = vmatprep.subr.mxu0 %v85_v1  ;;  %v176_v4 = vld [vmem:[#allocation4 + $0x8] sm:$0xff]  ;;  %v175_v6 = vld [vmem:[#allocation4] sm:$0xff] }
  0x4c   :  { %v178_v5 = vld [vmem:[#allocation4 + $0x18] sm:$0xff]  ;;  %103 = vmatpush1.msra.mxu0 %v84_v2  ;;  %v177_v8 = vld [vmem:[#allocation4 + $0x10] sm:$0xff]  ;;  %v180_v9 = vld [vmem:[#allocation4 + $0x28] sm:$0xff] }
  0x4d   :  { %v496_v7 = vpack.c.bf16 %v178_v5, %v176_v4  ;;  %v182_v10 = vld [vmem:[#allocation4 + $0x38] sm:$0xff]  ;;  %457 = vmatmul.mubr.msk.f32.vlgmr.msra.gmra.mrb[0].mxu0 %vm98_vm0, %v83_v3  ;;  %v498_v11 = vpack.c.bf16 %v177_v8, %v175_v6  ;;  %v179_v13 = vld [vmem:[#allocation4 + $0x20] sm:$0xff]  ;;  %v181_v14 = vld [vmem:[#allocation4 + $0x30] sm:$0xff] }
  0x4e   :  { %v500_v12 = vpack.c.bf16 %v182_v10, %v180_v9  ;;  %v184_v15 = vld [vmem:[#allocation4 + $0x48] sm:$0xff]  ;;  %v186_v16 = vld [vmem:[#allocation4 + $0x58] sm:$0xff]  ;;  %v502_v17 = vpack.c.bf16 %v181_v14, %v179_v13  ;;  %v183_v19 = vld [vmem:[#allocation4 + $0x40] sm:$0xff] }
  0x4f   :  { %497 = vmatprep.subr.bf16.mxu1 %v496_v7  ;;  %v504_v18 = vpack.c.bf16 %v186_v16, %v184_v15  ;;  %v185_v20 = vld [vmem:[#allocation4 + $0x50] sm:$0xff]  ;;  %v188_v21 = vld [vmem:[#allocation4 + $0x68] sm:$0xff]  ;;  %v190_v22 = vld [vmem:[#allocation4 + $0x78] sm:$0xff] }
  0x50   :  { %499 = vmatpush1.bf16.msra.mxu1 %v498_v11  ;;  %v506_v23 = vpack.c.bf16 %v185_v20, %v183_v19  ;;  %v508_v24 = vpack.c.bf16 %v190_v22, %v188_v21  ;;  %v187_v25 = vld [vmem:[#allocation4 + $0x60] sm:$0xff]  ;;  %v189_v26 = vld [vmem:[#allocation4 + $0x70] sm:$0xff]  ;;  %v192_v27 = vld [vmem:[#allocation4 + $0x88] sm:$0xff] }
  0x51   :  { %501 = vmatprep.subr.bf16.mxu1 %v500_v12  ;;  %v194_v28 = vld [vmem:[#allocation4 + $0x98] sm:$0xff]  ;;  %v510_v29 = vpack.c.bf16 %v189_v26, %v187_v25  ;;  %v191_v31 = vld [vmem:[#allocation4 + $0x80] sm:$0xff]  ;;  %v193_v32 = vld [vmem:[#allocation4 + $0x90] sm:$0xff] }
  0x52   :  { %v512_v30 = vpack.c.bf16 %v194_v28, %v192_v27  ;;  %v196_v33 = vld [vmem:[#allocation4 + $0xa8] sm:$0xff]  ;;  %v198_v34 = vld [vmem:[#allocation4 + $0xb8] sm:$0xff]  ;;  %v514_v35 = vpack.c.bf16 %v193_v32, %v191_v31  ;;  %v195_v37 = vld [vmem:[#allocation4 + $0xa0] sm:$0xff] }
  0x53   :  { %v516_v36 = vpack.c.bf16 %v198_v34, %v196_v33  ;;  %v197_v38 = vld [vmem:[#allocation4 + $0xb0] sm:$0xff]  ;;  %v200_v39 = vld [vmem:[#allocation4 + $0xc8] sm:$0xff]  ;;  %v202_v40 = vld [vmem:[#allocation4 + $0xd8] sm:$0xff] }
  0x54   :  { %503 = vmatpush1.bf16.msra.mxu1 %v502_v17  ;;  %v518_v41 = vpack.c.bf16 %v197_v38, %v195_v37  ;;  %v520_v42 = vpack.c.bf16 %v202_v40, %v200_v39  ;;  %v199_v43 = vld [vmem:[#allocation4 + $0xc0] sm:$0xff]  ;;  %v201_v44 = vld [vmem:[#allocation4 + $0xd0] sm:$0xff]  ;;  %v204_v45 = vld [vmem:[#allocation4 + $0xe8] sm:$0xff] }
  0x55   :  { %505 = vmatprep.subr.bf16.mxu1 %v504_v18  ;;  %v206_v46 = vld [vmem:[#allocation4 + $0xf8] sm:$0xff]  ;;  %v522_v47 = vpack.c.bf16 %v201_v44, %v199_v43  ;;  %v203_v49 = vld [vmem:[#allocation4 + $0xe0] sm:$0xff]  ;;  %v205_v50 = vld [vmem:[#allocation4 + $0xf0] sm:$0xff] }
  0x56   :  { %v524_v48 = vpack.c.bf16 %v206_v46, %v204_v45  ;;  %v208_v51 = vld [vmem:[#allocation4 + $0x108] sm:$0xff]  ;;  %v210_v52 = vld [vmem:[#allocation4 + $0x118] sm:$0xff]  ;;  %v526_v53 = vpack.c.bf16 %v205_v50, %v203_v49  ;;  %v207_v55 = vld [vmem:[#allocation4 + $0x100] sm:$0xff] }
  0x57   :  { %v528_v54 = vpack.c.bf16 %v210_v52, %v208_v51  ;;  %v209_v56 = vld [vmem:[#allocation4 + $0x110] sm:$0xff]  ;;  %v212_v57 = vld [vmem:[#allocation4 + $0x128] sm:$0xff]  ;;  %v214_v58 = vld [vmem:[#allocation4 + $0x138] sm:$0xff] }
  0x58   :  { %507 = vmatpush1.bf16.msra.mxu1 %v506_v23  ;;  %v530_v59 = vpack.c.bf16 %v209_v56, %v207_v55  ;;  %v532_v60 = vpack.c.bf16 %v214_v58, %v212_v57  ;;  %v211_v61 = vld [vmem:[#allocation4 + $0x120] sm:$0xff]  ;;  %v213_v62 = vld [vmem:[#allocation4 + $0x130] sm:$0xff]  ;;  %v216_v63 = vld [vmem:[#allocation4 + $0x148] sm:$0xff] }
  0x59   :  { %509 = vmatprep.subr.bf16.mxu1 %v508_v24  ;;  %v218_v0 = vld [vmem:[#allocation4 + $0x158] sm:$0xff]  ;;  %v534_v1 = vpack.c.bf16 %v213_v62, %v211_v61  ;;  %v215_v3 = vld [vmem:[#allocation4 + $0x140] sm:$0xff]  ;;  %v217_v4 = vld [vmem:[#allocation4 + $0x150] sm:$0xff] }
  0x5a   :  { %v536_v2 = vpack.c.bf16 %v218_v0, %v216_v63  ;;  %v220_v5 = vld [vmem:[#allocation4 + $0x168] sm:$0xff]  ;;  %v222_v6 = vld [vmem:[#allocation4 + $0x178] sm:$0xff]  ;;  %v538_v7 = vpack.c.bf16 %v217_v4, %v215_v3  ;;  %v219_v9 = vld [vmem:[#allocation4 + $0x160] sm:$0xff] }
  0x5b   :  { %v540_v8 = vpack.c.bf16 %v222_v6, %v220_v5  ;;  %v221_v10 = vld [vmem:[#allocation4 + $0x170] sm:$0xff]  ;;  %v224_v11 = vld [vmem:[#allocation4 + $0x188] sm:$0xff]  ;;  %v226_v12 = vld [vmem:[#allocation4 + $0x198] sm:$0xff] }
  0x5c   :  { %511 = vmatpush1.bf16.msra.mxu1 %v510_v29  ;;  %v542_v13 = vpack.c.bf16 %v221_v10, %v219_v9  ;;  %v544_v14 = vpack.c.bf16 %v226_v12, %v224_v11  ;;  %v223_v15 = vld [vmem:[#allocation4 + $0x180] sm:$0xff]  ;;  %v225_v16 = vld [vmem:[#allocation4 + $0x190] sm:$0xff]  ;;  %v228_v17 = vld [vmem:[#allocation4 + $0x1a8] sm:$0xff]  ;;  %v88_v11 = vlaneseq }
  0x5d   :  { %513 = vmatprep.subr.bf16.mxu1 %v512_v30  ;;  %v230_v18 = vld [vmem:[#allocation4 + $0x1b8] sm:$0xff]  ;;  %v546_v19 = vpack.c.bf16 %v225_v16, %v223_v15  ;;  %v227_v21 = vld [vmem:[#allocation4 + $0x1a0] sm:$0xff]  ;;  %v229_v22 = vld [vmem:[#allocation4 + $0x1b0] sm:$0xff] }
  0x5e   :  { %v548_v20 = vpack.c.bf16 %v230_v18, %v228_v17  ;;  %v232_v23 = vld [vmem:[#allocation4 + $0x1c8] sm:$0xff]  ;;  %v234_v24 = vld [vmem:[#allocation4 + $0x1d8] sm:$0xff]  ;;  %v550_v25 = vpack.c.bf16 %v229_v22, %v227_v21  ;;  %v231_v27 = vld [vmem:[#allocation4 + $0x1c0] sm:$0xff]  ;;  %v89_v12 = vshrl.u32 %v88_v11, 7 }
  0x5f   :  { %v552_v26 = vpack.c.bf16 %v234_v24, %v232_v23  ;;  %v233_v28 = vld [vmem:[#allocation4 + $0x1d0] sm:$0xff]  ;;  %v236_v30 = vld [vmem:[#allocation4 + $0x1e8] sm:$0xff]  ;;  %v238_v31 = vld [vmem:[#allocation4 + $0x1f8] sm:$0xff] }
  0x60   :  { %515 = vmatpush1.bf16.msra.mxu1 %v514_v35  ;;  %v554_v29 = vpack.c.bf16 %v233_v28, %v231_v27  ;;  %v556_v32 = vpack.c.bf16 %v238_v31, %v236_v30  ;;  %v235_v33 = vld [vmem:[#allocation4 + $0x1e0] sm:$0xff]  ;;  %v237_v34 = vld [vmem:[#allocation4 + $0x1f0] sm:$0xff]  ;;  %v341_v37 = vld [vmem:[#allocation6 + $0x88] sm:$0xff]  ;;  %v94_v15 = vsub.s32 1, %v89_v12 }
  0x61   :  { %517 = vmatprep.subr.bf16.mxu1 %v516_v36  ;;  %v558_v35 = vpack.c.bf16 %v237_v34, %v235_v33  ;;  %v340_v36 = vld [vmem:[#allocation6 + $0x80] sm:$0xff]  ;;  %v325_v40 = vld [vmem:[#allocation6 + $0x8] sm:$0xff]  ;;  %v326_v45 = vld [vmem:[#allocation6 + $0x10] sm:$0xff] }
  0x62   :  { %v324_v38 = vld [vmem:[#allocation6] sm:$0xff]  ;;  %v560_v39 = vpack.c.bf16 %v341_v37, %v340_v36  ;;  %v327_v46 = vld [vmem:[#allocation6 + $0x18] sm:$0xff]  ;;  %v329_v52 = vld [vmem:[#allocation6 + $0x28] sm:$0xff] }
  0x63   :  { %v562_v43 = vpack.c.bf16 %v325_v40, %v324_v38  ;;  %v566_v49 = vpack.c.bf16 %v327_v46, %v326_v45  ;;  %v328_v51 = vld [vmem:[#allocation6 + $0x20] sm:$0xff]  ;;  %v330_v57 = vld [vmem:[#allocation6 + $0x30] sm:$0xff]  ;;  %v331_v58 = vld [vmem:[#allocation6 + $0x38] sm:$0xff] }
  0x64   :  { %519 = vmatpush1.bf16.msra.mxu1 %v518_v41  ;;  %v342_v41 = vld [vmem:[#allocation6 + $0x90] sm:$0xff]  ;;  %561 = vmatprep.subr.bf16.mxu0 %v560_v39  ;;  %v570_v55 = vpack.c.bf16 %v329_v52, %v328_v51  ;;  %v574_v61 = vpack.c.bf16 %v331_v58, %v330_v57  ;;  %v332_v63 = vld [vmem:[#allocation6 + $0x40] sm:$0xff]  ;;  %v333_v0 = vld [vmem:[#allocation6 + $0x48] sm:$0xff] }
  0x65   :  { %521 = vmatprep.subr.bf16.mxu1 %v520_v42  ;;  %v343_v42 = vld [vmem:[#allocation6 + $0x98] sm:$0xff]  ;;  %563 = vmatpush3.bf16.msra.mxu0 %v562_v43  ;;  %v578_v3 = vpack.c.bf16 %v333_v0, %v332_v63  ;;  %v334_v5 = vld [vmem:[#allocation6 + $0x50] sm:$0xff]  ;;  %v336_v24 = vld [vmem:[#allocation6 + $0x60] sm:$0xff] }
  0x66   :  { %v564_v44 = vpack.c.bf16 %v343_v42, %v342_v41  ;;  %v335_v6 = vld [vmem:[#allocation6 + $0x58] sm:$0xff]  ;;  %v354_v27 = vld [vmem:[#allocation6 + $0xf0] sm:$0xff]  ;;  %v239_v33 = vld [vmem:[%s827_s4] sm:$0x3] }
  0x67   :  { %v582_v9 = vpack.c.bf16 %v335_v6, %v334_v5  ;;  %v355_v28 = vld [vmem:[#allocation6 + $0xf8] sm:$0xff]  ;;  %v338_v30 = vld [vmem:[#allocation6 + $0x70] sm:$0xff]  ;;  %v458_v43 = vld [vmem:[%s829_s6] ss:$0 sm:$0xff] }
  0x68   :  { %523 = vmatpush1.bf16.msra.mxu1 %v522_v47  ;;  %v344_v47 = vld [vmem:[#allocation6 + $0xa0] sm:$0xff]  ;;  %565 = vmatprep.subr.bf16.mxu0 %v564_v44  ;;  %v339_v31 = vld [vmem:[#allocation6 + $0x78] sm:$0xff]  ;;  %v459_v46 = vld [vmem:[%s830_s7] ss:$0 sm:$0xff] }
  0x69   :  { %525 = vmatprep.subr.bf16.mxu1 %v524_v48  ;;  %v345_v48 = vld [vmem:[#allocation6 + $0xa8] sm:$0xff]  ;;  %567 = vmatpush3.bf16.msra.mxu0 %v566_v49 }
  0x6a   :  { %v568_v50 = vpack.c.bf16 %v345_v48, %v344_v47  ;;  %v460_v48 = vld [vmem:[#allocation7] ss:$0 sm:$0xff] }
  0x6c   :  { %527 = vmatpush1.bf16.msra.mxu1 %v526_v53  ;;  %v346_v53 = vld [vmem:[#allocation6 + $0xb0] sm:$0xff]  ;;  %569 = vmatprep.subr.bf16.mxu0 %v568_v50 }
  0x6d   :  { %529 = vmatprep.subr.bf16.mxu1 %v528_v54  ;;  %v347_v54 = vld [vmem:[#allocation6 + $0xb8] sm:$0xff]  ;;  %571 = vmatpush3.bf16.msra.mxu0 %v570_v55 }
  0x6e   :  { %v572_v56 = vpack.c.bf16 %v347_v54, %v346_v53 }
  0x70   :  { %531 = vmatpush1.bf16.msra.mxu1 %v530_v59  ;;  %v348_v59 = vld [vmem:[#allocation6 + $0xc0] sm:$0xff]  ;;  %573 = vmatprep.subr.bf16.mxu0 %v572_v56 }
  0x71   :  { %533 = vmatprep.subr.bf16.mxu1 %v532_v60  ;;  %v349_v60 = vld [vmem:[#allocation6 + $0xc8] sm:$0xff]  ;;  %575 = vmatpush3.bf16.msra.mxu0 %v574_v61 }
  0x72   :  { %v576_v62 = vpack.c.bf16 %v349_v60, %v348_v59 }
  0x74   :  { %535 = vmatpush1.bf16.msra.mxu1 %v534_v1  ;;  %v350_v1 = vld [vmem:[#allocation6 + $0xd0] sm:$0xff]  ;;  %577 = vmatprep.subr.bf16.mxu0 %v576_v62 }
  0x75   :  { %537 = vmatprep.subr.bf16.mxu1 %v536_v2  ;;  %v351_v2 = vld [vmem:[#allocation6 + $0xd8] sm:$0xff]  ;;  %579 = vmatpush3.bf16.msra.mxu0 %v578_v3 }
  0x76   :  { %v580_v4 = vpack.c.bf16 %v351_v2, %v350_v1 }
  0x78   :  { %539 = vmatpush1.bf16.msra.mxu1 %v538_v7  ;;  %v352_v7 = vld [vmem:[#allocation6 + $0xe0] sm:$0xff]  ;;  %581 = vmatprep.subr.bf16.mxu0 %v580_v4 }
  0x79   :  { %541 = vmatprep.subr.bf16.mxu1 %v540_v8  ;;  %v353_v8 = vld [vmem:[#allocation6 + $0xe8] sm:$0xff]  ;;  %583 = vmatpush3.bf16.msra.mxu0 %v582_v9 }
  0x7a   :  { %v584_v10 = vpack.c.bf16 %v353_v8, %v352_v7 }
  0x7c   :  { %543 = vmatpush1.bf16.msra.mxu1 %v542_v13  ;;  %585 = vmatprep.subr.bf16.mxu0 %v584_v10  ;;  %v90_v13 = vsub.s32 0, %v89_v12 }
  0x7d   :  { %545 = vmatprep.subr.bf16.mxu1 %v544_v14  ;;  %v86_v14 = vld [vmem:[%s825_s2] sm:$0x3] }
  0x7e   :  { %v91_v16 = vrot.slane %v86_v14, %v90_v13  ;;  %v95_v17 = vrot.slane %v86_v14, %v94_v15  ;;  %v244_v34 = vrot.slane %v239_v33, %v90_v13 }
  0x80   :  { %547 = vmatpush1.bf16.msra.mxu1 %v546_v19 }
  0x81   :  { %549 = vmatprep.subr.bf16.mxu1 %v548_v20 }
  0x84   :  { %551 = vmatpush1.bf16.msra.mxu1 %v550_v25  ;;  %v337_v25 = vld [vmem:[#allocation6 + $0x68] sm:$0xff] }
  0x85   :  { %553 = vmatprep.subr.bf16.mxu1 %v552_v26  ;;  %v586_v26 = vpack.c.bf16 %v337_v25, %v336_v24 }
  0x87   :  { %587 = vmatpush3.bf16.msra.mxu0 %v586_v26 }
  0x88   :  { %555 = vmatpush1.bf16.msra.mxu1 %v554_v29  ;;  %v588_v29 = vpack.c.bf16 %v355_v28, %v354_v27 }
  0x89   :  { %557 = vmatprep.subr.bf16.mxu1 %v556_v32  ;;  %v590_v32 = vpack.c.bf16 %v339_v31, %v338_v30 }
  0x8a   :  { %589 = vmatprep.subr.bf16.mxu0 %v588_v29 }
  0x8b   :  { %591 = vmatpush3.bf16.msra.mxu0 %v590_v32 }
  0x8c   :  { %559 = vmatpush1.bf16.msra.mxu1 %v558_v35  ;;  %v248_v35 = vrot.slane %v239_v33, %v94_v15 }
 0x120   :  { %v168_v18 = vpop.f32.mrb[0].mxu0 }
 0x121   :  { %v169_v19 = vadd.f32 %v168_v18, %v91_v16  ;;  %v170_v20 = vpop.f32.mrb[1].mxu0 }
 0x122   :  { %v171_v21 = vadd.f32 %v170_v20, %v95_v17 }
 0x123   :  { %v173_v23 = vmax.f32 %v169_v19, 0.0 }
 0x124   :  { %v174_v22 = vmax.f32 %v171_v21, 0.0 }
 0x126   :  { %315 = vmatprep.mubr.f32.mxu1 %v174_v22 }
 0x127   :  { %316 = vmatmul.mubr.f32.vlgmr.msra.gmra.mrb[0].mxu1 %v173_v23 }
 0x1fa   :  { %v317_v36 = vpop.f32.mrb[0].mxu1 }
 0x1fb   :  { %v318_v37 = vadd.f32 %v317_v36, %v244_v34  ;;  %v319_v38 = vpop.f32.mrb[1].mxu1 }
 0x1fc   :  { %v320_v39 = vadd.f32 %v319_v38, %v248_v35 }
 0x1fd   :  { %v322_v41 = vmax.f32 %v318_v37, 0.0 }
 0x1fe   :  { %v323_v40 = vmax.f32 %v320_v39, 0.0 }
 0x200   :  { %427 = vmatprep.mubr.f32.mxu0 %v323_v40 }
 0x201   :  { %428 = vmatmul.mubr.f32.vlgmr.msra.gmra.mrb[2].mxu0 %v322_v41 }
 0x2d4   :  { %v493_v42 = vpop.f32.mrb[2].mxu0 }
 0x2d5   :  { %v494_v44 = vpop.f32.mrb[3].mxu0 }
 0x2d6   :  { %v495_v45 = vadd.f32 %v494_v44, %v493_v42 }
 0x2d8   :  { %v430_v47 = vadd.f32 %v495_v45, %v458_v43 }
 0x2da   :  { %v440_v49 = vmax.f32 %v430_v47, %v459_v46 }
 0x2dc   :  { %v448_v50 = vmin.f32 %v440_v49, %v460_v48 }
 0x2de   :  { %449 = vst [vmem:[%s832_s9] sm:$0xff] %v448_v50 }
 0x2df   :  { %454 = vsyncpa [#allocation3], 1 }
 0x2e0   :  { %455 = vsyncpa [#allocation5], 1 }
 0x2e1   :  { %456 = vsyncpa [#allocation8], 1 }

</bundles_post_ra>
